<compile_context>
chip_gen: v5e
topology: v5e:2x2
jax: 0.10.0
libtpu: 0.0.40
codegen_flags: <defaults>
</compile_context>

<pallas_src>
import jax
import jax.numpy as jnp
from jax import lax
from jax.experimental import pallas as pl
from jax.experimental.pallas import tpu as pltpu

# ----------------------------- configuration -------------------------------
T = 4            # number of video frames
C = 4            # image channels (pixel_mean / pixel_std have C entries)
H = W = 16       # spatial size (divisible -> ImageList padding is a no-op)
HW = H * W
Q = 16           # num_queries
D = 32           # query hidden dim
E = 32           # tracking embedding dim
K = 8            # num_classes
K1 = K + 1       # classes + "no object"
OBJ_CLS = 2      # binary objectness head
TOPK = 10        # test_topk_per_image
WINDOW = 10      # run_window_inference window_size
ALPHA = 0.7      # embedding EMA in post_processing
HEAD_DIM = K1 + OBJ_CLS + E      # 43 = concatenated cls/obj/emb head width
HEAD_PAD = 128                   # lane-dense padded fused-head output width


# ------------------------------ Pallas kernel ------------------------------
def head_kernel(x_ref, mean_ref, std_ref, qe_ref, wf_ref, wheads_ref,
                bheads_ref, wmask_ref, head_ref, mask_ref):
    """Fused whole-window head.

    x_ref      : (Tc, C, HW)   frames, native NCHW with spatial flattened
    mean/std   : (C, 1)        per-channel pixel statistics
    qe_ref     : (Q, D)        learned query embeddings
    wf_ref     : (C, D)        frame-feature conditioning projection
    wheads_ref : (D, 128)      [w_cls | w_obj | w_emb | 0-pad] fused head
    bheads_ref : (1, 128)      [b_cls | b_obj | 0     | 0-pad]
    wmask_ref  : (C, D)        per-pixel mask-feature projection
    head_ref   : (Tc*Q, 128)   lane-dense fused cls/obj/emb outputs
    mask_ref   : (Tc, Q, HW)   per-pixel mask logits
    """
    x = x_ref[...]                                    # (Tc, C, HW)
    tc, c, _ = x.shape
    qn, dn = qe_ref.shape

    # pixel normalization: (x - mean) / std, lane dim = HW (all 128 lanes).
    inv_std = 1.0 / std_ref[...]                      # (C, 1), exact
    xn = (x - mean_ref[...][None]) * inv_std[None]    # (Tc, C, HW)

    # synthetic "backbone": per-frame global-average-pooled feature.
    f = jnp.mean(xn, axis=-1)                         # (Tc, C)

    # queries conditioned on the frame feature, flattened to one big M dim.
    fw = jnp.dot(f, wf_ref[...], preferred_element_type=jnp.float32)  # (Tc, D)
    q = qe_ref[...][None, :, :] + fw[:, None, :]      # (Tc, Q, D)
    q2 = q.reshape(tc * qn, dn)                       # (Tc*Q, D)

    # fused class / objectness / embedding heads: one (Tc*Q, D) @ (D, 128)
    # matmul and a single unmasked 128-lane store.
    head_ref[...] = (jnp.dot(q2, wheads_ref[...],
                             preferred_element_type=jnp.float32)
                     + bheads_ref[...])

    # per-pixel mask logits:  q @ w_mask^T @ x_norm  ==  q @ (x_norm^T w_mask)^T
    a = lax.dot_general(q2, wmask_ref[...], (((1,), (1,)), ((), ())),
                        preferred_element_type=jnp.float32)   # (Tc*Q, C)
    mask_ref[...] = jnp.einsum('tqc,tcp->tqp', a.reshape(tc, qn, c), xn,
                               preferred_element_type=jnp.float32)


# ------------------------------ Pallas wrapper ------------------------------
def sem_seg_head_forward(frames_nchw, params):
    """frames_nchw: (Tc, C, H, W) float32 -> per-frame head outputs."""
    Tc = frames_nchw.shape[0]
    x = frames_nchw.reshape(Tc, C, HW)                # native NCHW, no transpose

    # fuse the three small heads into one lane-padded (D, 128) weight slab.
    w_heads = jnp.concatenate(
        [params["w_cls"], params["w_obj"], params["w_emb"],
         jnp.zeros((D, HEAD_PAD - HEAD_DIM), jnp.float32)], axis=1)
    b_heads = jnp.concatenate(
        [params["b_cls"], params["b_obj"],
         jnp.zeros((1, HEAD_PAD - K1 - OBJ_CLS), jnp.float32)], axis=1)

    vmem = pl.BlockSpec(memory_space=pltpu.MemorySpace.VMEM)
    head, masks = pl.pallas_call(
        head_kernel,
        out_shape=(jax.ShapeDtypeStruct((Tc * Q, HEAD_PAD), jnp.float32),
                   jax.ShapeDtypeStruct((Tc, Q, HW), jnp.float32)),
        in_specs=[vmem] * 8,
        out_specs=(vmem, vmem),
    )(x, params["pixel_mean"], params["pixel_std"], params["query_embed"],
      params["w_feat"], w_heads, b_heads, params["w_mask"])

    head = head.reshape(Tc, Q, HEAD_PAD)
    logits = head[..., :K1]                           # (Tc, Q, K+1)
    obj = head[..., K1:K1 + OBJ_CLS]                  # (Tc, Q, 2)
    emb = head[..., K1 + OBJ_CLS:K1 + OBJ_CLS + E]    # (Tc, Q, E)
    masks = masks.reshape(Tc, Q, H, W)
    return logits, obj, masks, emb


def run_window_inference(frames_nchw, params, window_size=WINDOW):
    Tn = frames_nchw.shape[0]
    iters = Tn // window_size + (1 if Tn % window_size else 0)
    logits, objs, masks, embds = [], [], [], []
    for i in range(iters):
        chunk = frames_nchw[i * window_size:(i + 1) * window_size]
        lg, ob, mk, em = sem_seg_head_forward(chunk, params)
        logits.append(lg); objs.append(ob); masks.append(mk); embds.append(em)
    return {
        "pred_logits": jnp.concatenate(logits, axis=0),
        "pred_object_logits": jnp.concatenate(objs, axis=0),
        "pred_masks": jnp.concatenate(masks, axis=0),
        "pred_embds": jnp.concatenate(embds, axis=0),
    }


# -------------------- tracking / post-processing (plain JAX) ----------------
def greedy_assignment(cost_t):
    # TODO(synk): scipy.optimize.linear_sum_assignment (exact Hungarian) has no
    # JAX/Pallas equivalent; replaced by an on-device greedy row-wise match.
    Qn = cost_t.shape[0]

    def body(j, carry):
        used, idx = carry
        row = jnp.where(used, jnp.inf, cost_t[j])
        c = jnp.argmin(row).astype(jnp.int32)
        return used.at[c].set(True), idx.at[j].set(c)

    used0 = jnp.zeros((Qn,), jnp.bool_)
    idx0 = jnp.zeros((Qn,), jnp.int32)
    _, idx = lax.fori_loop(0, Qn, body, (used0, idx0))
    return idx


def match_from_embds(tgt_embds, cur_embds):
    # cosine-similarity cost (a few KB; fuses under jit — no host round trip).
    cn = cur_embds * lax.rsqrt(
        jnp.sum(cur_embds * cur_embds, axis=1, keepdims=True) + 1e-12)
    tn = tgt_embds * lax.rsqrt(
        jnp.sum(tgt_embds * tgt_embds, axis=1, keepdims=True) + 1e-12)
    cos = cn @ tn.T                                   # (Q_cur, Q_tgt)
    return greedy_assignment((1.0 - cos).T)           # (Q_tgt,) -> cur indices


def post_processing(outputs):
    pred_logits = outputs["pred_logits"]              # (T, Q, K+1)
    pred_obj = outputs["pred_object_logits"]          # (T, Q, 2)
    pred_masks = outputs["pred_masks"]                # (T, Q, H, W)
    pred_embds = outputs["pred_embds"]                # (T, Q, E)
    Tn = pred_logits.shape[0]

    out_logits = [pred_logits[0]]
    out_obj = [pred_obj[0]]
    out_masks = [pred_masks[0]]
    out_embds = [pred_embds[0]]
    for i in range(1, Tn):
        indices = match_from_embds(out_embds[-1], pred_embds[i])
        out_logits.append(pred_logits[i][indices])
        out_obj.append(pred_obj[i][indices])
        out_masks.append(pred_masks[i][indices])
        out_embds.append(ALPHA * pred_embds[i][indices] +
                         (1.0 - ALPHA) * out_embds[-1])

    per_frame_logits = jnp.stack(out_logits, axis=1)  # (Q, T, K+1)
    per_frame_obj = jnp.stack(out_obj, axis=1)        # (Q, T, 2)
    avg_logits = sum(out_logits) / len(out_logits)    # (Q, K+1)
    avg_obj = sum(out_obj) / len(out_obj)             # (Q, 2)
    masks = jnp.stack(out_masks, axis=1)              # (Q, T, H, W)

    outputs = dict(outputs)
    outputs["pred_logits"] = avg_logits[None]
    outputs["pred_obj_logits"] = avg_obj[None]
    outputs["pred_per_frame_logits"] = per_frame_logits
    outputs["pred_per_frame_obj_logits"] = per_frame_obj
    outputs["pred_masks"] = masks[None]
    return outputs


def combined_scores(cls_logits, obj_logits):
    # sqrt(sigmoid(cls[..., :-1]) * softmax(obj)[..., :-1]); with a 2-class
    # objectness head softmax(o)[..., :1] == sigmoid(o0 - o1).
    sig = jax.nn.sigmoid(cls_logits[..., :K])
    obj = jax.nn.sigmoid(obj_logits[..., 0:1] - obj_logits[..., 1:2])
    return jnp.sqrt(sig * obj)


def mask_quality_scores(masks_flat):
    sig = jax.nn.sigmoid(masks_flat)
    pos = (masks_flat > 0).astype(jnp.float32)
    return jnp.sum(sig * pos, axis=1) / (jnp.sum(pos, axis=1) + 1e-6)


def instance_inference(mask_cls, mask_obj_cls, mask_pred, image_size,
                       per_frame_cls, per_frame_obj):
    scores = combined_scores(mask_cls, mask_obj_cls)               # (Q, K)
    pf_scores = combined_scores(per_frame_cls, per_frame_obj)      # (Q, T, K)

    labels = jnp.tile(jnp.arange(K, dtype=jnp.int32), (Q, 1)).reshape(-1)
    scores_per_image, topk_idx = lax.top_k(scores.reshape(-1), TOPK)
    labels_per_image = labels[topk_idx]
    q_idx = topk_idx // K

    mask_pred = mask_pred[q_idx]                                   # (TOPK, T, H, W)
    pf_sel = pf_scores[q_idx]                                      # (TOPK, T, K)
    pf_sel = pf_sel[jnp.arange(TOPK), :, labels_per_image]         # (TOPK, T)
    mask_ignore = pf_sel < scores_per_image[:, None] * 0.1
    mask_pred = jnp.where(mask_ignore[:, :, None, None], -1.0, mask_pred)

    mask_q = mask_quality_scores(mask_pred.reshape(TOPK, -1))      # (TOPK,)
    return {
        "pred_masks": mask_pred,
        "pred_boxes": jnp.zeros((TOPK, 4), jnp.float32),
        "scores": scores_per_image * mask_q,
        "pred_classes": labels_per_image,
        "image_size": image_size,
    }


def ov2seg_video_forward(frames_nchw, params):
    """Inference forward pass of OV2SegVideo (single video, T frames)."""
    outputs = run_window_inference(frames_nchw, params)
    outputs = post_processing(outputs)
    mask_cls = outputs["pred_logits"][0]
    mask_obj = outputs["pred_obj_logits"][0]
    mask_pred = outputs["pred_masks"][0]
    per_frame_cls = outputs["pred_per_frame_logits"]
    per_frame_obj = outputs["pred_per_frame_obj_logits"]
    image_size = (H, W)
    instances = instance_inference(mask_cls, mask_obj, mask_pred, image_size,
                                   per_frame_cls, per_frame_obj)
    return [{
        "instances": instances,
        "interpolate_meta": (image_size, H, W, (H, W)),
    }]


# ------------------------------ parameter init ------------------------------
def build_params(key):
    ks = jax.random.split(key, 8)
    return {
        "pixel_mean": jnp.array([0.30, 0.40, 0.50, 0.20],
                                jnp.float32).reshape(C, 1),
        "pixel_std": jnp.array([0.25, 0.25, 0.30, 0.20],
                               jnp.float32).reshape(C, 1),
        "query_embed": 0.1 * jax.random.normal(ks[0], (Q, D), jnp.float32),
        "w_feat": 0.1 * jax.random.normal(ks[1], (C, D), jnp.float32),
        "w_cls": 0.1 * jax.random.normal(ks[2], (D, K1), jnp.float32),
        "b_cls": 0.1 * jax.random.normal(ks[3], (1, K1), jnp.float32),
        "w_obj": 0.1 * jax.random.normal(ks[4], (D, OBJ_CLS), jnp.float32),
        "b_obj": 0.1 * jax.random.normal(ks[5], (1, OBJ_CLS), jnp.float32),
        "w_emb": 0.1 * jax.random.normal(ks[6], (D, E), jnp.float32),
        "w_mask": 0.1 * jax.random.normal(ks[7], (C, D), jnp.float32),
    }


if __name__ == "__main__":
    key = jax.random.PRNGKey(0)
    k_img, k_par = jax.random.split(key)
    # batched_inputs[0]['image'] : list of T frames, each (C, H, W) NCHW.
    frames = jax.random.uniform(k_img, (T, C, H, W), jnp.float32)
    params = build_params(k_par)

    forward = jax.jit(ov2seg_video_forward)
    results = forward(frames, params)
    inst = results[0]["instances"]
    jax.block_until_ready(inst["scores"])
    jax.block_until_ready(inst["pred_masks"])
    jax.block_until_ready(inst["pred_classes"])
    print("KERNEL_OK")
</pallas_src>

<mosaic_0001>
module attributes {stable_mosaic.version = 11 : i64} {
  func.func @head_kernel(%arg0: memref<4x4x256xf32, #tpu.memory_space<vmem>>, %arg1: memref<4x1xf32, #tpu.memory_space<vmem>>, %arg2: memref<4x1xf32, #tpu.memory_space<vmem>>, %arg3: memref<16x32xf32, #tpu.memory_space<vmem>>, %arg4: memref<4x32xf32, #tpu.memory_space<vmem>>, %arg5: memref<32x128xf32, #tpu.memory_space<vmem>>, %arg6: memref<1x128xf32, #tpu.memory_space<vmem>>, %arg7: memref<4x32xf32, #tpu.memory_space<vmem>>, %arg8: memref<64x128xf32, #tpu.memory_space<vmem>>, %arg9: memref<4x16x256xf32, #tpu.memory_space<vmem>>) attributes {dimension_semantics = [], scalar_prefetch = 0 : i64, scratch_operands = 0 : i64, tpu.core_type = #tpu.core_type<tc>} {
    %c0 = arith.constant 0 : index
    %c0_0 = arith.constant 0 : index
    %c0_1 = arith.constant 0 : index
    %0 = vector.load %arg0[%c0, %c0_0, %c0_1] : memref<4x4x256xf32, #tpu.memory_space<vmem>>, vector<4x4x256xf32>
    %c0_2 = arith.constant 0 : index
    %c0_3 = arith.constant 0 : index
    %1 = vector.load %arg2[%c0_2, %c0_3] : memref<4x1xf32, #tpu.memory_space<vmem>>, vector<4x1xf32>
    %cst = arith.constant 1.000000e+00 : f32
    %2 = vector.broadcast %cst : f32 to vector<4x1xf32>
    %3 = arith.divf %2, %1 : vector<4x1xf32>
    %c0_4 = arith.constant 0 : index
    %c0_5 = arith.constant 0 : index
    %4 = vector.load %arg1[%c0_4, %c0_5] : memref<4x1xf32, #tpu.memory_space<vmem>>, vector<4x1xf32>
    %5 = vector.shape_cast %4 : vector<4x1xf32> to vector<1x4x1xf32>
    %6 = vector.broadcast %5 : vector<1x4x1xf32> to vector<4x4x256xf32>
    %7 = arith.subf %0, %6 : vector<4x4x256xf32>
    %8 = vector.shape_cast %3 : vector<4x1xf32> to vector<1x4x1xf32>
    %9 = vector.broadcast %8 : vector<1x4x1xf32> to vector<4x4x256xf32>
    %10 = arith.mulf %7, %9 : vector<4x4x256xf32>
    %cst_6 = arith.constant dense<0.000000e+00> : vector<4x4xf32>
    %11 = vector.multi_reduction <add>, %10, %cst_6 [2] : vector<4x4x256xf32> to vector<4x4xf32>
    %cst_7 = arith.constant 2.560000e+02 : f32
    %12 = vector.broadcast %cst_7 : f32 to vector<4x4xf32>
    %13 = arith.divf %11, %12 : vector<4x4xf32>
    %c0_8 = arith.constant 0 : index
    %c0_9 = arith.constant 0 : index
    %14 = vector.load %arg4[%c0_8, %c0_9] : memref<4x32xf32, #tpu.memory_space<vmem>>, vector<4x32xf32>
    %cst_10 = arith.constant dense<0.000000e+00> : vector<4x32xf32>
    %15 = tpu.matmul %13, %14, %cst_10 {dimension_numbers = #tpu.dot_dimension_numbers<[1], [0], [0], [1], [0, 0, 1, 1], [], []>} : vector<4x4xf32>, vector<4x32xf32>, vector<4x32xf32> -> vector<4x32xf32>
    %c0_11 = arith.constant 0 : index
    %c0_12 = arith.constant 0 : index
    %16 = vector.load %arg3[%c0_11, %c0_12] : memref<16x32xf32, #tpu.memory_space<vmem>>, vector<16x32xf32>
    %17 = vector.shape_cast %16 : vector<16x32xf32> to vector<1x16x32xf32>
    %18 = vector.shape_cast %15 : vector<4x32xf32> to vector<4x1x32xf32>
    %19 = vector.broadcast %17 : vector<1x16x32xf32> to vector<4x16x32xf32>
    %20 = vector.broadcast %18 : vector<4x1x32xf32> to vector<4x16x32xf32>
    %21 = arith.addf %19, %20 : vector<4x16x32xf32>
    %22 = vector.shape_cast %21 : vector<4x16x32xf32> to vector<64x32xf32>
    %c0_13 = arith.constant 0 : index
    %c0_14 = arith.constant 0 : index
    %23 = vector.load %arg5[%c0_13, %c0_14] : memref<32x128xf32, #tpu.memory_space<vmem>>, vector<32x128xf32>
    %cst_15 = arith.constant dense<0.000000e+00> : vector<64x128xf32>
    %24 = tpu.matmul %22, %23, %cst_15 {dimension_numbers = #tpu.dot_dimension_numbers<[1], [0], [0], [1], [0, 0, 1, 1], [], []>} : vector<64x32xf32>, vector<32x128xf32>, vector<64x128xf32> -> vector<64x128xf32>
    %c0_16 = arith.constant 0 : index
    %c0_17 = arith.constant 0 : index
    %25 = vector.load %arg6[%c0_16, %c0_17] : memref<1x128xf32, #tpu.memory_space<vmem>>, vector<1x128xf32>
    %26 = vector.broadcast %25 : vector<1x128xf32> to vector<64x128xf32>
    %27 = arith.addf %24, %26 : vector<64x128xf32>
    %c0_18 = arith.constant 0 : index
    %c0_19 = arith.constant 0 : index
    %28 = vector.load %arg8[%c0_18, %c0_19] : memref<64x128xf32, #tpu.memory_space<vmem>>, vector<64x128xf32>
    tpu.vector_store %arg8[%c0_18, %c0_19], %27 {strides = array<i32>} : memref<64x128xf32, #tpu.memory_space<vmem>>, vector<64x128xf32>,
    %c0_20 = arith.constant 0 : index
    %c0_21 = arith.constant 0 : index
    %29 = vector.load %arg7[%c0_20, %c0_21] : memref<4x32xf32, #tpu.memory_space<vmem>>, vector<4x32xf32>
    %cst_22 = arith.constant dense<0.000000e+00> : vector<64x4xf32>
    %30 = tpu.matmul %22, %29, %cst_22 {dimension_numbers = #tpu.dot_dimension_numbers<[1], [1], [0], [0], [0, 0, 1, 0], [], []>} : vector<64x32xf32>, vector<4x32xf32>, vector<64x4xf32> -> vector<64x4xf32>
    %31 = vector.shape_cast %30 : vector<64x4xf32> to vector<4x16x4xf32>
    "tpu.trace_start"() <{level = 10 : i32, message = "tqc,tcp->tqp"}> : () -> ()
    %cst_23 = arith.constant dense<0.000000e+00> : vector<4x16x256xf32>
    %32 = tpu.matmul %31, %10, %cst_23 {dimension_numbers = #tpu.dot_dimension_numbers<[2], [1], [1], [2], [0, 0, 0, 1, 1, 2], [0], [0]>} : vector<4x16x4xf32>, vector<4x4x256xf32>, vector<4x16x256xf32> -> vector<4x16x256xf32>
    "tpu.trace_stop"() : () -> ()
    %c0_24 = arith.constant 0 : index
    %c0_25 = arith.constant 0 : index
    %c0_26 = arith.constant 0 : index
    %33 = vector.load %arg9[%c0_24, %c0_25, %c0_26] : memref<4x16x256xf32, #tpu.memory_space<vmem>>, vector<4x16x256xf32>
    tpu.vector_store %arg9[%c0_24, %c0_25, %c0_26], %32 {strides = array<i32>} : memref<4x16x256xf32, #tpu.memory_space<vmem>>, vector<4x16x256xf32>,
    return
  }
}

</mosaic_0001>

<bundles_post_ra>
// kernel: ov2seg_video_forward.1
= control target key start
LH: loop header
LB: loop body
LE: loop exit
PB: predicated region body
PF: predicated region fallthrough
CT: control target
= control target key end

     0   :  { %v641_v0 = vmov 0   ;;  %vm105_vm4 = vcmask 1043456   ;;  %v642_v14 = vmov 839922192   ;;  %v643_v59 = vmov 256.0   ;;  %s868_s1 = inlined_call_operand.vmem [shape: f32[4,1], index: 1, kind: input, shape index: {}]   ;;  %s869_s2 = inlined_call_operand.vmem [shape: f32[4,1], index: 2, kind: input, shape index: {}]   ;;  %s870_s4 = inlined_call_operand.vmem [shape: f32[4,32], index: 4, kind: input, shape index: {}]   ;;  %s871_s0 = inlined_call_operand.vmem [shape: f32[4,4,256], index: 0, kind: input, shape index: {}]   ;;  %s872_s5 = inlined_call_operand.vmem [shape: f32[32,128], index: 5, kind: input, shape index: {}]   ;;  %s873_s6 = inlined_call_operand.vmem [shape: f32[1,128], index: 6, kind: input, shape index: {}]   ;;  %s874_s7 = inlined_call_operand.vmem [shape: f32[4,32], index: 7, kind: input, shape index: {}]   ;;  %s875_s3 = inlined_call_operand.vmem [shape: f32[16,32], index: 3, kind: input, shape index: {}]   ;;  %s876_s8 = inlined_call_operand.vmem [shape: f32[64,128], index: 8, kind: output, shape index: {0}]   ;;  %s877_s9 = inlined_call_operand.vmem [shape: f32[4,16,256], index: 9, kind: output, shape index: {1}]  }
   0x1   :  { %635 = vset.pattern.permute.xlu0 %v641_v0  ;;  %v51_v1 = vld [vmem:[%s868_s1] sm:$0xf]  ;;  %v57_v15 = vunpack.c.l.s4 %v642_v14  ;;  %v32_v20 = vld [vmem:[%s871_s0 + $0x8] sm:$0xff]  ;;  %v33_v21 = vld [vmem:[%s871_s0 + $0x10] sm:$0xff]  ;;  %vm148_vm6 = vcmask 1041409   ;;  %vm150_vm7 = vcmask 1042434  }
   0x2   :  { %v35_v2 = vld [vmem:[%s869_s2] sm:$0xf]  ;;  %54 = vperm.xlu0 %635, %v51_v1   ;;  %v34_v22 = vld [vmem:[%s871_s0 + $0x18] sm:$0xff]  ;;  %vm152_vm8 = vcmask 1043459   ;;  %vm154_vm9 = vcmask 31744   ;;  %vm210_vm10 = vcmask 261120  }
   0x3   :  { %637 = vrcp.f32 %v35_v2  ;;  %v47_v5 = vand.u32 2147483648, %v35_v2  ;;  %vm41_vm0 = vweird.f32 %v35_v2  ;;  %v45_v7 = vand.u32 2147483647, %v35_v2  ;;  %v137_v13 = vld [vmem:[%s870_s4] sm:$0xf]  ;;  %v205_v61 = vld [vmem:[%s872_s5 + $0x18] sm:$0xff] }
   0x4   :  { %589 = vmatpush.msk.msra.mxu0 %vm105_vm4, %v137_v13  ;;  %v58_v17 = vunpack.c.0.s8 %v57_v15  ;;  %v31_v19 = vld [vmem:[%s871_s0] sm:$0xff]  ;;  %639 = vrcp.f32 %v643_v59  ;;  %247 = vmatpush.msra.mxu1 %v205_v61 }
   0x5   :  { %v48_v9 = vor.u32 1.1754944e-38, %v47_v5  ;;  %vm46_vm3 = vcmp.eq.f32.partialorder %v45_v7, 8.507059e+37 }
   0x9   :  { %v638_v3 = vpop.eup %637 }
   0xa   :  { %v37_v4 = vmul.f32 %v638_v3, %v35_v2  ;;  %vm42_vm1 = vweird.f32 %v638_v3  ;;  %v640_v60 = vpop.eup %639 }
   0xb   :  { %vm43_vm2 = vmor %vm41_vm0, %vm42_vm1  ;;  %v127_v62 = vmul.f32 256.0, %v640_v60  ;;  %vm131_vm5 = vweird.f32 %v640_v60 }
   0xc   :  { %v38_v6 = vsub.f32 1.0, %v37_v4  ;;  %v142_v4 = vlaneseq }
   0xd   :  { %v128_v63 = vsub.f32 1.0, %v127_v62 }
   0xe   :  { %v39_v8 = vmul.f32 %v638_v3, %v38_v6  ;;  %v143_v6 = vand.u32 127, %v142_v4 }
   0xf   :  { %v129_v0 = vmul.f32 %v640_v60, %v128_v63 }
  0x10   :  { %v40_v10 = vadd.f32 %v638_v3, %v39_v8 }
  0x11   :  { %v130_v1 = vadd.f32 %v640_v60, %v129_v0 }
  0x12   :  { %v44_v11 = vsel %vm43_vm2, %v638_v3, %v40_v10 }
  0x13   :  { %v49_v12 = vsel %vm46_vm3, %v48_v9, %v44_v11  ;;  %v132_v5 = vsel %vm131_vm5, %v640_v60, %v130_v1 }
  0x14   :  { %67 = vperm.xlu0 %635, %v49_v12  }
  0x74   :  { %v55_v16 = vpop.permute.xlu0 %54 }
  0x75   :  { %v59_v18 = vperm.slane %v55_v16, %v58_v17 }
  0x77   :  { %v61_v24 = vsub.f32 %v31_v19, %v59_v18  ;;  %v62_v25 = vsub.f32 %v32_v20, %v59_v18  ;;  %v63_v26 = vsub.f32 %v33_v21, %v59_v18  ;;  %v64_v28 = vsub.f32 %v34_v22, %v59_v18  ;;  %v204_v20 = vld [vmem:[%s872_s5 + $0x10] sm:$0xff]  ;;  %v203_v21 = vld [vmem:[%s872_s5 + $0x8] sm:$0xff]  ;;  %v284_v22 = vld [vmem:[%s874_s7] sm:$0xf] }
  0x78   :  { %248 = vmatpush.msra.mxu1 %v204_v20  ;;  %599 = vmatpush.xpose.msk.msra.mxu2 %vm210_vm10, %v284_v22 }
  0x7a   :  { %249 = vmatpush.msra.mxu1 %v203_v21 }
  0x86   :  { %v68_v23 = vpop.permute.xlu0 %67 }
  0x87   :  { %v72_v27 = vperm.slane %v68_v23, %v58_v17  ;;  %v202_v23 = vld [vmem:[%s872_s5] sm:$0xff] }
  0x88   :  { %250 = vmatpush.msra.mxu1 %v202_v23 }
  0x89   :  { %v74_v29 = vmul.f32 %v72_v27, %v61_v24  ;;  %v75_v30 = vmul.f32 %v72_v27, %v62_v25  ;;  %v76_v31 = vmul.f32 %v72_v27, %v63_v26  ;;  %v77_v32 = vmul.f32 %v72_v27, %v64_v28  ;;  %v180_v25 = vld [vmem:[%s875_s3] sm:$0xff]  ;;  %v181_v28 = vld [vmem:[%s875_s3 + $0x8] sm:$0xff] }
  0x8b   :  { %82 = vst [vmem:[#allocation1] ss:$2 sm:$0xff] %v74_v29 }
  0x8c   :  { %86 = vst [vmem:[#allocation1 + $0x10] ss:$2 sm:$0xff] %v75_v30 }
  0x8d   :  { %90 = vst [vmem:[#allocation1 + $0x20] ss:$2 sm:$0xff] %v76_v31 }
  0x8e   :  { %94 = vst [vmem:[#allocation1 + $0x30] ss:$2 sm:$0xff] %v77_v32 }
  0x92   :  { %v83_v33 = vld.sshfl [vmem:[#allocation1] sm:$0xff pattern:$0x75316420]  ;;  %v84_v34 = vld.sshfl [vmem:[#allocation1 + $0x8] sm:$0xff pattern:$0x75316420] }
  0x93   :  { %v106_v35 = vsel %vm105_vm4, %v83_v33, 0.0  ;;  %v107_v36 = vsel %vm105_vm4, %v84_v34, 0.0  ;;  %329 = vst [vmem:[#allocation1] ss:$2 sm:$0xff] %v74_v29 }
  0x94   :  { %v91_v37 = vld.sshfl [vmem:[#allocation1 + $0x20] sm:$0xff pattern:$0x75316420]  ;;  %v92_v38 = vld.sshfl [vmem:[#allocation1 + $0x28] sm:$0xff pattern:$0x75316420]  ;;  %v108_v39 = vadd.f32 %v107_v36, %v106_v35 }
  0x95   :  { %v116_v40 = vsel %vm105_vm4, %v91_v37, 0.0  ;;  %v117_v41 = vsel %vm105_vm4, %v92_v38, 0.0  ;;  %v95_v43 = vld.sshfl [vmem:[#allocation1 + $0x30] sm:$0xff pattern:$0x75316420] }
  0x96   :  { %v118_v42 = vadd.f32 %v117_v41, %v116_v40  ;;  %109 = vadd.xlane.f32.xlu1 %v108_v39  ;;  %v87_v44 = vld.sshfl [vmem:[#allocation1 + $0x10] sm:$0xff pattern:$0x75316420]  ;;  %v96_v45 = vld.sshfl [vmem:[#allocation1 + $0x38] sm:$0xff pattern:$0x75316420] }
  0x97   :  { %v88_v46 = vld.sshfl [vmem:[#allocation1 + $0x18] sm:$0xff pattern:$0x75316420]  ;;  %v111_v47 = vsel %vm105_vm4, %v87_v44, 0.0  ;;  %v121_v51 = vsel %vm105_vm4, %v95_v43, 0.0  ;;  %v122_v52 = vsel %vm105_vm4, %v96_v45, 0.0 }
  0x98   :  { %119 = vadd.xlane.f32.xlu2 %v118_v42  ;;  %v112_v48 = vsel %vm105_vm4, %v88_v46, 0.0  ;;  %v123_v54 = vadd.f32 %v122_v52, %v121_v51  ;;  %v636_v42 = vld [vmem:[%s873_s6] ss:$0 sm:$0xff] }
  0x99   :  { %v113_v53 = vadd.f32 %v112_v48, %v111_v47 }
  0x9a   :  { %v330_v49 = vld.sshfl [vmem:[#allocation1] sm:$0xff pattern:$0x75316420]  ;;  %v331_v50 = vld.sshfl [vmem:[#allocation1 + $0x8] sm:$0xff pattern:$0x75316420] }
  0x9b   :  { %608 = vmatpush.msk.msra.mxu3 %vm105_vm4, %v330_v49  ;;  %611 = vmatpush.msk.msrb.mxu0 %vm105_vm4, %v331_v50  ;;  %388 = vst [vmem:[#allocation1] ss:$2 sm:$0xff] %v75_v30 }
  0x9e   :  { %114 = vadd.xlane.f32.xlu1 %v113_v53 }
  0xa0   :  { %124 = vadd.xlane.f32.xlu2 %v123_v54 }
  0xa2   :  { %v389_v55 = vld.sshfl [vmem:[#allocation1] sm:$0xff pattern:$0x75316420]  ;;  %v390_v56 = vld.sshfl [vmem:[#allocation1 + $0x8] sm:$0xff pattern:$0x75316420] }
  0xa3   :  { %614 = vmatpush.msk.msrb.mxu3 %vm105_vm4, %v389_v55  ;;  %447 = vst [vmem:[#allocation1] ss:$2 sm:$0xff] %v76_v31 }
  0xaa   :  { %v727_v57 = vld.sshfl [vmem:[#allocation1] sm:$0xff pattern:$0x75316420]  ;;  %v729_v58 = vld.sshfl [vmem:[#allocation1 + $0x8] sm:$0xff pattern:$0x75316420] }
  0xab   :  { %506 = vst [vmem:[#allocation1] ss:$2 sm:$0xff] %v77_v32 }
  0xb2   :  { %v507_v52 = vld.sshfl [vmem:[#allocation1] sm:$0xff pattern:$0x75316420]  ;;  %v508_v53 = vld.sshfl [vmem:[#allocation1 + $0x8] sm:$0xff pattern:$0x75316420] }
 0x109   :  { %v110_v2 = vpop.xlane.xlu1 %109 }
 0x10a   :  { %v133_v7 = vmul.f32 %v132_v5, %v110_v2 }
 0x10b   :  { %v120_v3 = vpop.xlane.xlu2 %119 }
 0x10c   :  { %v135_v8 = vmul.f32 %v132_v5, %v120_v3  ;;  %v144_v12 = vperm.slane %v133_v7, %v143_v6 }
 0x10e   :  { %v146_v15 = vperm.slane %v135_v8, %v143_v6 }
 0x111   :  { %v115_v9 = vpop.xlane.xlu1 %114 }
 0x112   :  { %v134_v10 = vmul.f32 %v132_v5, %v115_v9 }
 0x113   :  { %v125_v11 = vpop.xlane.xlu2 %124 }
 0x114   :  { %v136_v13 = vmul.f32 %v132_v5, %v125_v11  ;;  %v145_v14 = vperm.slane %v134_v10, %v143_v6 }
 0x116   :  { %v147_v16 = vperm.slane %v136_v13, %v143_v6  ;;  %v149_v17 = vsel %vm148_vm6, %v145_v14, %v144_v12 }
 0x117   :  { %v151_v18 = vsel %vm150_vm7, %v146_v15, %v149_v17 }
 0x118   :  { %v153_v19 = vsel %vm152_vm8, %v147_v16, %v151_v18 }
 0x119   :  { %590 = vmatmul.msk.f32.vlgmr.msra.gmra.mxu0 %vm154_vm9, %v153_v19 }
 0x11a   :  { %617 = vmatpush.msk.msra.mxu0 %vm105_vm4, %v390_v56 }
 0x196   :  { %v177_v24 = vpop.f32.mrf.mxu0 }
 0x197   :  { %v186_v26 = vperm.slane %v177_v24, 0  ;;  %v183_v29 = vrot.slane %v177_v24, 1  ;;  %v184_v33 = vrot.slane %v177_v24, 2  ;;  %v185_v37 = vrot.slane %v177_v24, 3 }
 0x199   :  { %v194_v27 = vadd.f32 %v186_v26, %v180_v25  ;;  %v195_v30 = vadd.f32 %v186_v26, %v181_v28  ;;  %v187_v31 = vperm.slane %v183_v29, 0  ;;  %v188_v35 = vperm.slane %v184_v33, 0 }
 0x19a   :  { %v189_v39 = vperm.slane %v185_v37, 0 }
 0x19b   :  { %591 = vmatmul.msk.f32.vlgmr.msra.gmra.mxu1 %vm210_vm10, %v194_v27  ;;  %600 = vmatmul.msk.f32.vlgmr.msra.gmra.mxu2 %vm210_vm10, %v194_v27  ;;  %v196_v32 = vadd.f32 %v187_v31, %v180_v25  ;;  %v197_v34 = vadd.f32 %v187_v31, %v181_v28  ;;  %v198_v36 = vadd.f32 %v188_v35, %v180_v25 }
 0x19c   :  { %v199_v38 = vadd.f32 %v188_v35, %v181_v28  ;;  %v200_v40 = vadd.f32 %v189_v39, %v180_v25  ;;  %v201_v41 = vadd.f32 %v189_v39, %v181_v28 }
 0x1a3   :  { %592 = vmatmul.msk.f32.gmra.mxu1 %vm210_vm10, %v195_v30  ;;  %601 = vmatmul.msk.f32.gmra.mxu2 %vm210_vm10, %v195_v30 }
 0x1ab   :  { %593 = vmatmul.msk.f32.gmra.mxu1 %vm210_vm10, %v196_v32  ;;  %602 = vmatmul.msk.f32.gmra.mxu2 %vm210_vm10, %v196_v32 }
 0x1b3   :  { %594 = vmatmul.msk.f32.gmra.mxu1 %vm210_vm10, %v197_v34  ;;  %603 = vmatmul.msk.f32.gmra.mxu2 %vm210_vm10, %v197_v34 }
 0x1bb   :  { %595 = vmatmul.msk.f32.gmra.mxu1 %vm210_vm10, %v198_v36  ;;  %604 = vmatmul.msk.f32.gmra.mxu2 %vm210_vm10, %v198_v36 }
 0x1c3   :  { %596 = vmatmul.msk.f32.gmra.mxu1 %vm210_vm10, %v199_v38  ;;  %605 = vmatmul.msk.f32.gmra.mxu2 %vm210_vm10, %v199_v38 }
 0x1cb   :  { %597 = vmatmul.msk.f32.gmra.mxu1 %vm210_vm10, %v200_v40  ;;  %606 = vmatmul.msk.f32.gmra.mxu2 %vm210_vm10, %v200_v40 }
 0x1d3   :  { %598 = vmatmul.msk.f32.gmra.mxu1 %vm210_vm10, %v201_v41  ;;  %607 = vmatmul.msk.f32.gmra.mxu2 %vm210_vm10, %v201_v41 }
 0x218   :  { %v252_v43 = vpop.f32.mrf.mxu1 }
 0x219   :  { %v253_v44 = vadd.f32 %v636_v42, %v252_v43 }
 0x21b   :  { %276 = vst [vmem:[%s876_s8] sm:$0xff] %v253_v44 }
 0x21e   :  { %v305_v45 = vpop.f32.mrf.mxu2 }
 0x21f   :  { %609 = vmatmul.msk.f32.vlgmr.msra.gmra.mxu3 %vm154_vm9, %v305_v45  ;;  %612 = vmatmul.msk.f32.vlgmr.msrb.gmra.mxu0 %vm154_vm9, %v305_v45 }
 0x220   :  { %620 = vmatpush.msk.msra.mxu3 %vm105_vm4, %v727_v57  ;;  %623 = vmatpush.msk.msrb.mxu0 %vm105_vm4, %v729_v58  ;;  %v255_v46 = vpop.f32.mrf.mxu1 }
 0x221   :  { %v256_v47 = vadd.f32 %v636_v42, %v255_v46 }
 0x223   :  { %277 = vst [vmem:[%s876_s8 + $0x8] sm:$0xff] %v256_v47 }
 0x226   :  { %v308_v48 = vpop.f32.mrf.mxu2 }
 0x227   :  { %610 = vmatmul.msk.f32.gmra.mxu3 %vm154_vm9, %v308_v48  ;;  %613 = vmatmul.msk.f32.gmra.mxu0 %vm154_vm9, %v308_v48 }
 0x228   :  { %v258_v49 = vpop.f32.mrf.mxu1 }
 0x229   :  { %v259_v50 = vadd.f32 %v636_v42, %v258_v49 }
 0x22b   :  { %278 = vst [vmem:[%s876_s8 + $0x10] sm:$0xff] %v259_v50 }
 0x22e   :  { %v311_v51 = vpop.f32.mrf.mxu2 }
 0x22f   :  { %615 = vmatmul.msk.f32.vlgmr.msrb.gmra.mxu3 %vm154_vm9, %v311_v51  ;;  %618 = vmatmul.msk.f32.vlgmr.msra.gmra.mxu0 %vm154_vm9, %v311_v51 }
 0x230   :  { %626 = vmatpush.msk.msrb.mxu3 %vm105_vm4, %v507_v52  ;;  %629 = vmatpush.msk.msra.mxu0 %vm105_vm4, %v508_v53  ;;  %v261_v54 = vpop.f32.mrf.mxu1 }
 0x231   :  { %v262_v55 = vadd.f32 %v636_v42, %v261_v54 }
 0x233   :  { %279 = vst [vmem:[%s876_s8 + $0x18] sm:$0xff] %v262_v55 }
 0x236   :  { %v314_v56 = vpop.f32.mrf.mxu2 }
 0x237   :  { %616 = vmatmul.msk.f32.gmra.mxu3 %vm154_vm9, %v314_v56  ;;  %619 = vmatmul.msk.f32.gmra.mxu0 %vm154_vm9, %v314_v56 }
 0x238   :  { %v264_v57 = vpop.f32.mrf.mxu1 }
 0x239   :  { %v265_v58 = vadd.f32 %v636_v42, %v264_v57 }
 0x23b   :  { %280 = vst [vmem:[%s876_s8 + $0x20] sm:$0xff] %v265_v58 }
 0x23e   :  { %v317_v59 = vpop.f32.mrf.mxu2 }
 0x23f   :  { %621 = vmatmul.msk.f32.vlgmr.msra.gmra.mxu3 %vm154_vm9, %v317_v59  ;;  %624 = vmatmul.msk.f32.vlgmr.msrb.gmra.mxu0 %vm154_vm9, %v317_v59 }
 0x240   :  { %v267_v60 = vpop.f32.mrf.mxu1 }
 0x241   :  { %v268_v61 = vadd.f32 %v636_v42, %v267_v60 }
 0x243   :  { %281 = vst [vmem:[%s876_s8 + $0x28] sm:$0xff] %v268_v61 }
 0x246   :  { %v320_v62 = vpop.f32.mrf.mxu2 }
 0x247   :  { %622 = vmatmul.msk.f32.gmra.mxu3 %vm154_vm9, %v320_v62  ;;  %625 = vmatmul.msk.f32.gmra.mxu0 %vm154_vm9, %v320_v62 }
 0x248   :  { %v270_v63 = vpop.f32.mrf.mxu1 }
 0x249   :  { %v271_v0 = vadd.f32 %v636_v42, %v270_v63 }
 0x24b   :  { %282 = vst [vmem:[%s876_s8 + $0x30] sm:$0xff] %v271_v0 }
 0x24e   :  { %v323_v1 = vpop.f32.mrf.mxu2 }
 0x24f   :  { %627 = vmatmul.msk.f32.vlgmr.msrb.gmra.mxu3 %vm154_vm9, %v323_v1  ;;  %630 = vmatmul.msk.f32.vlgmr.msra.gmra.mxu0 %vm154_vm9, %v323_v1 }
 0x250   :  { %v273_v2 = vpop.f32.mrf.mxu1 }
 0x251   :  { %v274_v3 = vadd.f32 %v636_v42, %v273_v2 }
 0x253   :  { %283 = vst [vmem:[%s876_s8 + $0x38] sm:$0xff] %v274_v3 }
 0x256   :  { %v326_v4 = vpop.f32.mrf.mxu2 }
 0x257   :  { %628 = vmatmul.msk.f32.gmra.mxu3 %vm154_vm9, %v326_v4  ;;  %631 = vmatmul.msk.f32.gmra.mxu0 %vm154_vm9, %v326_v4 }
 0x29c   :  { %v382_v5 = vpop.f32.mrf.mxu0 }
 0x29d   :  { %566 = vst [vmem:[%s877_s9 + $0x8] sm:$0xff] %v382_v5 }
 0x2a2   :  { %v359_v6 = vpop.f32.mrf.mxu3 }
 0x2a3   :  { %565 = vst [vmem:[%s877_s9] sm:$0xff] %v359_v6 }
 0x2a4   :  { %v385_v7 = vpop.f32.mrf.mxu0 }
 0x2a5   :  { %568 = vst [vmem:[%s877_s9 + $0x18] sm:$0xff] %v385_v7 }
 0x2aa   :  { %v362_v8 = vpop.f32.mrf.mxu3 }
 0x2ab   :  { %567 = vst [vmem:[%s877_s9 + $0x10] sm:$0xff] %v362_v8 }
 0x2ac   :  { %v441_v9 = vpop.f32.mrf.mxu0 }
 0x2ad   :  { %570 = vst [vmem:[%s877_s9 + $0x28] sm:$0xff] %v441_v9 }
 0x2b2   :  { %v418_v10 = vpop.f32.mrf.mxu3 }
 0x2b3   :  { %569 = vst [vmem:[%s877_s9 + $0x20] sm:$0xff] %v418_v10 }
 0x2b4   :  { %v444_v11 = vpop.f32.mrf.mxu0 }
 0x2b5   :  { %572 = vst [vmem:[%s877_s9 + $0x38] sm:$0xff] %v444_v11 }
 0x2ba   :  { %v421_v12 = vpop.f32.mrf.mxu3 }
 0x2bb   :  { %571 = vst [vmem:[%s877_s9 + $0x30] sm:$0xff] %v421_v12 }
 0x2bc   :  { %v500_v13 = vpop.f32.mrf.mxu0 }
 0x2bd   :  { %574 = vst [vmem:[%s877_s9 + $0x48] sm:$0xff] %v500_v13 }
 0x2c2   :  { %v477_v14 = vpop.f32.mrf.mxu3 }
 0x2c3   :  { %573 = vst [vmem:[%s877_s9 + $0x40] sm:$0xff] %v477_v14 }
 0x2c4   :  { %v503_v15 = vpop.f32.mrf.mxu0 }
 0x2c5   :  { %576 = vst [vmem:[%s877_s9 + $0x58] sm:$0xff] %v503_v15 }
 0x2ca   :  { %v480_v16 = vpop.f32.mrf.mxu3 }
 0x2cb   :  { %575 = vst [vmem:[%s877_s9 + $0x50] sm:$0xff] %v480_v16 }
 0x2cc   :  { %v559_v17 = vpop.f32.mrf.mxu0 }
 0x2cd   :  { %578 = vst [vmem:[%s877_s9 + $0x68] sm:$0xff] %v559_v17 }
 0x2d2   :  { %v536_v18 = vpop.f32.mrf.mxu3 }
 0x2d3   :  { %577 = vst [vmem:[%s877_s9 + $0x60] sm:$0xff] %v536_v18 }
 0x2d4   :  { %v562_v19 = vpop.f32.mrf.mxu0 }
 0x2d5   :  { %580 = vst [vmem:[%s877_s9 + $0x78] sm:$0xff] %v562_v19 }
 0x2da   :  { %v539_v20 = vpop.f32.mrf.mxu3 }
 0x2db   :  { %579 = vst [vmem:[%s877_s9 + $0x70] sm:$0xff] %v539_v20 }

// kernel: tile.7
= control target key start
LH: loop header
LB: loop body
LE: loop exit
PB: predicated region body
PF: predicated region fallthrough
CT: control target
= control target key end

     0   :  { %s131_s10 = smov 120   ;;  %s132_s11 = smov 104   ;;  %vm3_vm0 = vcmask 64512   ;;  %vm9_vm1 = vcmask 1048512   ;;  %vm15_vm2 = vcmask 982912   ;;  %vm21_vm3 = vcmask 917312   ;;  %s207_s0 = inlined_call_operand.vmem [shape: s32[16,1,1,8], index: 0, kind: input, shape index: {}]   ;;  %s208_s1 = inlined_call_operand.vmem [shape: s32[128], index: 1, kind: output, shape index: {}]  }
   0x1   :  { %v101_v0 = vld [vmem:[%s207_s0 + $0xf] sm:$0x1]   ;;  %v103_v1 = vld [vmem:[%s207_s0 + $0xd] sm:$0x1]   ;;  %v105_v2 = vld [vmem:[%s207_s0 + $0xb] sm:$0x1]  }
   0x2   :  { %7 = vrot.lane.b32.xlu0 %v101_v0, %s131_s10  ;;  %19 = vrot.lane.b32.xlu1 %v103_v1, %s132_s11  ;;  %s133_s14 = smov 88   ;;  %v102_v3 = vld [vmem:[%s207_s0 + $0xe] sm:$0x1]   ;;  %v104_v4 = vld [vmem:[%s207_s0 + $0xc] sm:$0x1]   ;;  %s134_s19 = smov 112  }
   0x3   :  { %31 = vrot.lane.b32.xlu2 %v105_v2, %s133_s14  ;;  %s135_s20 = smov 96   ;;  %v106_v5 = vld [vmem:[%s207_s0 + $0xa] sm:$0x1]   ;;  %s136_s23 = smov 80   ;;  %v107_v6 = vld [vmem:[%s207_s0 + $0x9] sm:$0x1]  }
   0x4   :  { %v108_v7 = vld [vmem:[%s207_s0 + $0x8] sm:$0x1]   ;;  %s137_s28 = smov 72   ;;  %s138_s29 = smov 64   ;;  %v109_v8 = vld [vmem:[%s207_s0 + $0x7] sm:$0x1]  }
   0x5   :  { %s139_s3 = smov 56   ;;  %v110_v9 = vld [vmem:[%s207_s0 + $0x6] sm:$0x1]   ;;  %v111_v10 = vld [vmem:[%s207_s0 + $0x5] sm:$0x1]   ;;  %s140_s8 = smov 48  }
   0x6   :  { %s141_s9 = smov 40   ;;  %v112_v11 = vld [vmem:[%s207_s0 + $0x4] sm:$0x1]   ;;  %s142_s12 = smov 32   ;;  %v113_v12 = vld [vmem:[%s207_s0 + $0x3] sm:$0x1]  }
   0x7   :  { %v114_v13 = vld [vmem:[%s207_s0 + $0x2] sm:$0x1]   ;;  %s143_s17 = smov 24   ;;  %s144_s18 = smov 16   ;;  %v115_v14 = vld [vmem:[%s207_s0 + $0x1] sm:$0x1]  }
   0x8   :  { %s145_s21 = smov 8   ;;  %v2_v15 = vld [vmem:[%s207_s0] sm:$0x1]   ;;  %vm27_vm4 = vcmask 851712   ;;  %vm33_vm5 = vcmask 786112   ;;  %vm39_vm6 = vcmask 720512  }
   0x9   :  { %4 = vst.msk [vmem:[#allocation0] sm:$0x1] %vm3_vm0, %v2_v15   ;;  %vm45_vm7 = vcmask 654912   ;;  %vm51_vm8 = vcmask 589312   ;;  %vm57_vm9 = vcmask 523712   ;;  %vm63_vm10 = vcmask 458112  }
   0xa   :  { %13 = vrot.lane.b32.xlu0 %v102_v3, %s134_s19  ;;  %25 = vrot.lane.b32.xlu1 %v104_v4, %s135_s20  ;;  %vm69_vm11 = vcmask 392512   ;;  %vm75_vm12 = vcmask 326912   ;;  %vm81_vm13 = vcmask 261312   ;;  %vm87_vm14 = vcmask 195712  }
   0xb   :  { %37 = vrot.lane.b32.xlu2 %v106_v5, %s136_s23  ;;  %vm93_vm15 = vcmask 130112  }
  0x12   :  { %43 = vrot.lane.b32.xlu0 %v107_v6, %s137_s28  ;;  %49 = vrot.lane.b32.xlu1 %v108_v7, %s138_s29 }
  0x13   :  { %55 = vrot.lane.b32.xlu2 %v109_v8, %s139_s3 }
  0x1a   :  { %61 = vrot.lane.b32.xlu0 %v110_v9, %s140_s8  ;;  %67 = vrot.lane.b32.xlu1 %v111_v10, %s141_s9 }
  0x1b   :  { %73 = vrot.lane.b32.xlu2 %v112_v11, %s142_s12 }
  0x22   :  { %79 = vrot.lane.b32.xlu0 %v113_v12, %s143_s17  ;;  %85 = vrot.lane.b32.xlu1 %v114_v13, %s144_s18 }
  0x23   :  { %91 = vrot.lane.b32.xlu2 %v115_v14, %s145_s21 }
  0x5d   :  { %v32_v16 = vpop.permute.xlu2 %31  }
  0x65   :  { %v38_v17 = vpop.permute.xlu2 %37  }
  0x6d   :  { %v56_v18 = vpop.permute.xlu2 %55  }
  0x74   :  { %v8_v19 = vpop.permute.xlu0 %7   ;;  %v20_v20 = vpop.permute.xlu1 %19  }
  0x75   :  { %10 = vst.msk [vmem:[#allocation0] sm:$0x1] %vm9_vm1, %v8_v19   ;;  %v74_v21 = vpop.permute.xlu2 %73  }
  0x7c   :  { %v14_v22 = vpop.permute.xlu0 %13   ;;  %v26_v23 = vpop.permute.xlu1 %25  }
  0x7d   :  { %16 = vst.msk [vmem:[#allocation0] sm:$0x1] %vm15_vm2, %v14_v22   ;;  %v92_v24 = vpop.permute.xlu2 %91  }
  0x7e   :  { %22 = vst.msk [vmem:[#allocation0] sm:$0x1] %vm21_vm3, %v20_v20  }
  0x7f   :  { %28 = vst.msk [vmem:[#allocation0] sm:$0x1] %vm27_vm4, %v26_v23  }
  0x80   :  { %34 = vst.msk [vmem:[#allocation0] sm:$0x1] %vm33_vm5, %v32_v16  }
  0x81   :  { %40 = vst.msk [vmem:[#allocation0] sm:$0x1] %vm39_vm6, %v38_v17  }
  0x84   :  { %v44_v25 = vpop.permute.xlu0 %43   ;;  %v50_v26 = vpop.permute.xlu1 %49  }
  0x85   :  { %46 = vst.msk [vmem:[#allocation0] sm:$0x1] %vm45_vm7, %v44_v25  }
  0x86   :  { %52 = vst.msk [vmem:[#allocation0] sm:$0x1] %vm51_vm8, %v50_v26  }
  0x87   :  { %58 = vst.msk [vmem:[#allocation0] sm:$0x1] %vm57_vm9, %v56_v18  }
  0x8c   :  { %v62_v27 = vpop.permute.xlu0 %61   ;;  %v68_v28 = vpop.permute.xlu1 %67  }
  0x8d   :  { %64 = vst.msk [vmem:[#allocation0] sm:$0x1] %vm63_vm10, %v62_v27  }
  0x8e   :  { %70 = vst.msk [vmem:[#allocation0] sm:$0x1] %vm69_vm11, %v68_v28  }
  0x8f   :  { %76 = vst.msk [vmem:[#allocation0] sm:$0x1] %vm75_vm12, %v74_v21  }
  0x94   :  { %v80_v29 = vpop.permute.xlu0 %79   ;;  %v86_v30 = vpop.permute.xlu1 %85  }
  0x95   :  { %82 = vst.msk [vmem:[#allocation0] sm:$0x1] %vm81_vm13, %v80_v29  }
  0x96   :  { %88 = vst.msk [vmem:[#allocation0] sm:$0x1] %vm87_vm14, %v86_v30  }
  0x97   :  { %94 = vst.msk [vmem:[#allocation0] sm:$0x1] %vm93_vm15, %v92_v24  }
  0x9e   :  { %v97_v31 = vld [vmem:[#allocation0] sm:$0x1] }
  0x9f   :  { %100 = vst [vmem:[%s208_s1] sm:$0x1] %v97_v31 }

// kernel: squeeze.45
= control target key start
LH: loop header
LB: loop body
LE: loop exit
PB: predicated region body
PF: predicated region fallthrough
CT: control target
= control target key end

     0   :  { %s385_s10 = smov 112   ;;  %s386_s11 = smov 96   ;;  %vm3_vm0 = vcmask 130048   ;;  %s714_s0 = inlined_call_operand.vmem [shape: f32[1,16,256], index: 0, kind: input, shape index: {}]   ;;  %s715_s1 = inlined_call_operand.vmem [shape: f32[16,1,16,16], index: 1, kind: output, shape index: {}]  }
   0x1   :  { %v41_v0 = vld.sshfl [vmem:[%s714_s0] sm:$0xff pattern:$0xb3a29180]   ;;  %v306_v1 = vld.sshfl [vmem:[%s714_s0 + $0x10] sm:$0xff pattern:$0xb3a29180]  }
   0x2   :  { %42 = vrot.lane.b32.xlu0 %v41_v0, %s385_s10  ;;  %60 = vrot.lane.b32.xlu1 %v306_v1, %s385_s10  ;;  %v303_v2 = vld.sshfl [vmem:[%s714_s0 + $0x4] sm:$0xff pattern:$0xb3a29180]   ;;  %v309_v3 = vld.sshfl [vmem:[%s714_s0 + $0x14] sm:$0xff pattern:$0xb3a29180]  }
   0x3   :  { %77 = vrot.lane.b32.xlu2 %v41_v0, %s386_s11  ;;  %s387_s16 = smov 80   ;;  %s388_s17 = smov 64   ;;  %v2_v25 = vld [vmem:[%s714_s0] sm:$0xff]   ;;  %v286_v28 = vld [vmem:[%s714_s0 + $0x8] sm:$0xff]   ;;  %v291_v31 = vld [vmem:[%s714_s0 + $0x10] sm:$0xff]  }
   0x4   :  { %s389_s18 = smov 48   ;;  %s390_s19 = smov 32   ;;  %4 = vst.msk [vmem:[%s715_s1] ss:$16 sm:$0x3] %vm3_vm0, %v2_v25   ;;  %v296_v34 = vld [vmem:[%s714_s0 + $0x18] sm:$0xff]  }
   0x5   :  { %s391_s20 = smov 16   ;;  %5 = vst.msk [vmem:[%s715_s1] ss:$16 sm:$0xc] %vm3_vm0, %v2_v25  }
   0x6   :  { %6 = vst.msk [vmem:[%s715_s1] ss:$16 sm:$0x30] %vm3_vm0, %v2_v25  }
   0x7   :  { %7 = vst.msk [vmem:[%s715_s1] ss:$16 sm:$0xc0] %vm3_vm0, %v2_v25  }
   0x8   :  { %287 = vst.msk [vmem:[%s715_s1 + $0x8] ss:$16 sm:$0x3] %vm3_vm0, %v286_v28  }
   0x9   :  { %288 = vst.msk [vmem:[%s715_s1 + $0x8] ss:$16 sm:$0xc] %vm3_vm0, %v286_v28  }
   0xa   :  { %51 = vrot.lane.b32.xlu0 %v303_v2, %s385_s10  ;;  %69 = vrot.lane.b32.xlu1 %v309_v3, %s385_s10  ;;  %289 = vst.msk [vmem:[%s715_s1 + $0x8] ss:$16 sm:$0x30] %vm3_vm0, %v286_v28  }
   0xb   :  { %86 = vrot.lane.b32.xlu2 %v303_v2, %s386_s11  ;;  %290 = vst.msk [vmem:[%s715_s1 + $0x8] ss:$16 sm:$0xc0] %vm3_vm0, %v286_v28  }
   0xc   :  { %292 = vst.msk [vmem:[%s715_s1 + $0x80] ss:$16 sm:$0x3] %vm3_vm0, %v291_v31  }
   0xd   :  { %293 = vst.msk [vmem:[%s715_s1 + $0x80] ss:$16 sm:$0xc] %vm3_vm0, %v291_v31  }
   0xe   :  { %294 = vst.msk [vmem:[%s715_s1 + $0x80] ss:$16 sm:$0x30] %vm3_vm0, %v291_v31  }
   0xf   :  { %295 = vst.msk [vmem:[%s715_s1 + $0x80] ss:$16 sm:$0xc0] %vm3_vm0, %v291_v31  }
  0x10   :  { %297 = vst.msk [vmem:[%s715_s1 + $0x88] ss:$16 sm:$0x3] %vm3_vm0, %v296_v34  }
  0x11   :  { %298 = vst.msk [vmem:[%s715_s1 + $0x88] ss:$16 sm:$0xc] %vm3_vm0, %v296_v34  }
  0x12   :  { %95 = vrot.lane.b32.xlu0 %v306_v1, %s386_s11  ;;  %104 = vrot.lane.b32.xlu1 %v309_v3, %s386_s11  ;;  %299 = vst.msk [vmem:[%s715_s1 + $0x88] ss:$16 sm:$0x30] %vm3_vm0, %v296_v34  }
  0x13   :  { %112 = vrot.lane.b32.xlu2 %v41_v0, %s387_s16  ;;  %300 = vst.msk [vmem:[%s715_s1 + $0x88] ss:$16 sm:$0xc0] %vm3_vm0, %v296_v34  }
  0x1a   :  { %121 = vrot.lane.b32.xlu0 %v303_v2, %s387_s16  ;;  %130 = vrot.lane.b32.xlu1 %v306_v1, %s387_s16 }
  0x1b   :  { %139 = vrot.lane.b32.xlu2 %v309_v3, %s387_s16 }
  0x22   :  { %147 = vrot.lane.b32.xlu0 %v41_v0, %s388_s17  ;;  %156 = vrot.lane.b32.xlu1 %v303_v2, %s388_s17 }
  0x23   :  { %165 = vrot.lane.b32.xlu2 %v306_v1, %s388_s17 }
  0x2a   :  { %174 = vrot.lane.b32.xlu0 %v309_v3, %s388_s17  ;;  %182 = vrot.lane.b32.xlu1 %v41_v0, %s389_s18 }
  0x2b   :  { %191 = vrot.lane.b32.xlu2 %v303_v2, %s389_s18 }
  0x32   :  { %200 = vrot.lane.b32.xlu0 %v306_v1, %s389_s18  ;;  %209 = vrot.lane.b32.xlu1 %v309_v3, %s389_s18 }
  0x33   :  { %217 = vrot.lane.b32.xlu2 %v41_v0, %s390_s19 }
  0x3a   :  { %226 = vrot.lane.b32.xlu0 %v303_v2, %s390_s19  ;;  %235 = vrot.lane.b32.xlu1 %v306_v1, %s390_s19 }
  0x3b   :  { %244 = vrot.lane.b32.xlu2 %v309_v3, %s390_s19 }
  0x42   :  { %252 = vrot.lane.b32.xlu0 %v41_v0, %s391_s20  ;;  %261 = vrot.lane.b32.xlu1 %v303_v2, %s391_s20 }
  0x43   :  { %270 = vrot.lane.b32.xlu2 %v306_v1, %s391_s20 }
  0x4a   :  { %279 = vrot.lane.b32.xlu0 %v309_v3, %s391_s20 }
  0x5d   :  { %v78_v4 = vpop.permute.xlu2 %77  }
  0x5e   :  { %312 = vst.msk [vmem:[%s715_s1 + $0x2] ss:$8 sm:$0xf] %vm3_vm0, %v78_v4  }
  0x5f   :  { %313 = vst.msk [vmem:[%s715_s1 + $0x2] ss:$8 sm:$0xf0] %vm3_vm0, %v78_v4  }
  0x65   :  { %v87_v5 = vpop.permute.xlu2 %86  }
  0x66   :  { %315 = vst.msk [vmem:[%s715_s1 + $0x42] ss:$8 sm:$0xf] %vm3_vm0, %v87_v5  }
  0x67   :  { %316 = vst.msk [vmem:[%s715_s1 + $0x42] ss:$8 sm:$0xf0] %vm3_vm0, %v87_v5  }
  0x6d   :  { %v113_v6 = vpop.permute.xlu2 %112  }
  0x6e   :  { %323 = vst.msk [vmem:[%s715_s1 + $0x3] ss:$8 sm:$0xf] %vm3_vm0, %v113_v6  }
  0x6f   :  { %324 = vst.msk [vmem:[%s715_s1 + $0x3] ss:$8 sm:$0xf0] %vm3_vm0, %v113_v6  }
  0x74   :  { %v43_v7 = vpop.permute.xlu0 %42   ;;  %v61_v8 = vpop.permute.xlu1 %60  }
  0x75   :  { %301 = vst.msk [vmem:[%s715_s1 + $0x1] ss:$8 sm:$0xf] %vm3_vm0, %v43_v7   ;;  %v140_v9 = vpop.permute.xlu2 %139  }
  0x76   :  { %302 = vst.msk [vmem:[%s715_s1 + $0x1] ss:$8 sm:$0xf0] %vm3_vm0, %v43_v7  }
  0x77   :  { %307 = vst.msk [vmem:[%s715_s1 + $0x81] ss:$8 sm:$0xf] %vm3_vm0, %v61_v8  }
  0x78   :  { %308 = vst.msk [vmem:[%s715_s1 + $0x81] ss:$8 sm:$0xf0] %vm3_vm0, %v61_v8  }
  0x79   :  { %332 = vst.msk [vmem:[%s715_s1 + $0xc3] ss:$8 sm:$0xf] %vm3_vm0, %v140_v9  }
  0x7a   :  { %333 = vst.msk [vmem:[%s715_s1 + $0xc3] ss:$8 sm:$0xf0] %vm3_vm0, %v140_v9  }
  0x7c   :  { %v52_v10 = vpop.permute.xlu0 %51   ;;  %v70_v11 = vpop.permute.xlu1 %69  }
  0x7d   :  { %304 = vst.msk [vmem:[%s715_s1 + $0x41] ss:$8 sm:$0xf] %vm3_vm0, %v52_v10   ;;  %v166_v12 = vpop.permute.xlu2 %165  }
  0x7e   :  { %305 = vst.msk [vmem:[%s715_s1 + $0x41] ss:$8 sm:$0xf0] %vm3_vm0, %v52_v10  }
  0x7f   :  { %310 = vst.msk [vmem:[%s715_s1 + $0xc1] ss:$8 sm:$0xf] %vm3_vm0, %v70_v11  }
  0x80   :  { %311 = vst.msk [vmem:[%s715_s1 + $0xc1] ss:$8 sm:$0xf0] %vm3_vm0, %v70_v11  }
  0x81   :  { %340 = vst.msk [vmem:[%s715_s1 + $0x84] ss:$8 sm:$0xf] %vm3_vm0, %v166_v12  }
  0x82   :  { %341 = vst.msk [vmem:[%s715_s1 + $0x84] ss:$8 sm:$0xf0] %vm3_vm0, %v166_v12  }
  0x84   :  { %v96_v13 = vpop.permute.xlu0 %95   ;;  %v105_v14 = vpop.permute.xlu1 %104  }
  0x85   :  { %318 = vst.msk [vmem:[%s715_s1 + $0x82] ss:$8 sm:$0xf] %vm3_vm0, %v96_v13   ;;  %v192_v15 = vpop.permute.xlu2 %191  }
  0x86   :  { %319 = vst.msk [vmem:[%s715_s1 + $0x82] ss:$8 sm:$0xf0] %vm3_vm0, %v96_v13  }
  0x87   :  { %321 = vst.msk [vmem:[%s715_s1 + $0xc2] ss:$8 sm:$0xf] %vm3_vm0, %v105_v14  }
  0x88   :  { %322 = vst.msk [vmem:[%s715_s1 + $0xc2] ss:$8 sm:$0xf0] %vm3_vm0, %v105_v14  }
  0x89   :  { %348 = vst.msk [vmem:[%s715_s1 + $0x45] ss:$8 sm:$0xf] %vm3_vm0, %v192_v15  }
  0x8a   :  { %349 = vst.msk [vmem:[%s715_s1 + $0x45] ss:$8 sm:$0xf0] %vm3_vm0, %v192_v15  }
  0x8c   :  { %v122_v16 = vpop.permute.xlu0 %121   ;;  %v131_v17 = vpop.permute.xlu1 %130  }
  0x8d   :  { %326 = vst.msk [vmem:[%s715_s1 + $0x43] ss:$8 sm:$0xf] %vm3_vm0, %v122_v16   ;;  %v218_v18 = vpop.permute.xlu2 %217  }
  0x8e   :  { %327 = vst.msk [vmem:[%s715_s1 + $0x43] ss:$8 sm:$0xf0] %vm3_vm0, %v122_v16  }
  0x8f   :  { %329 = vst.msk [vmem:[%s715_s1 + $0x83] ss:$8 sm:$0xf] %vm3_vm0, %v131_v17  }
  0x90   :  { %330 = vst.msk [vmem:[%s715_s1 + $0x83] ss:$8 sm:$0xf0] %vm3_vm0, %v131_v17  }
  0x91   :  { %356 = vst.msk [vmem:[%s715_s1 + $0x6] ss:$8 sm:$0xf] %vm3_vm0, %v218_v18  }
  0x92   :  { %357 = vst.msk [vmem:[%s715_s1 + $0x6] ss:$8 sm:$0xf0] %vm3_vm0, %v218_v18  }
  0x94   :  { %v148_v19 = vpop.permute.xlu0 %147   ;;  %v157_v20 = vpop.permute.xlu1 %156  }
  0x95   :  { %334 = vst.msk [vmem:[%s715_s1 + $0x4] ss:$8 sm:$0xf] %vm3_vm0, %v148_v19   ;;  %v245_v21 = vpop.permute.xlu2 %244  }
  0x96   :  { %335 = vst.msk [vmem:[%s715_s1 + $0x4] ss:$8 sm:$0xf0] %vm3_vm0, %v148_v19  }
  0x97   :  { %337 = vst.msk [vmem:[%s715_s1 + $0x44] ss:$8 sm:$0xf] %vm3_vm0, %v157_v20  }
  0x98   :  { %338 = vst.msk [vmem:[%s715_s1 + $0x44] ss:$8 sm:$0xf0] %vm3_vm0, %v157_v20  }
  0x99   :  { %365 = vst.msk [vmem:[%s715_s1 + $0xc6] ss:$8 sm:$0xf] %vm3_vm0, %v245_v21  }
  0x9a   :  { %366 = vst.msk [vmem:[%s715_s1 + $0xc6] ss:$8 sm:$0xf0] %vm3_vm0, %v245_v21  }
  0x9c   :  { %v175_v22 = vpop.permute.xlu0 %174   ;;  %v183_v23 = vpop.permute.xlu1 %182  }
  0x9d   :  { %343 = vst.msk [vmem:[%s715_s1 + $0xc4] ss:$8 sm:$0xf] %vm3_vm0, %v175_v22   ;;  %v271_v24 = vpop.permute.xlu2 %270  }
  0x9e   :  { %344 = vst.msk [vmem:[%s715_s1 + $0xc4] ss:$8 sm:$0xf0] %vm3_vm0, %v175_v22  }
  0x9f   :  { %345 = vst.msk [vmem:[%s715_s1 + $0x5] ss:$8 sm:$0xf] %vm3_vm0, %v183_v23  }
  0xa0   :  { %346 = vst.msk [vmem:[%s715_s1 + $0x5] ss:$8 sm:$0xf0] %vm3_vm0, %v183_v23  }
  0xa1   :  { %373 = vst.msk [vmem:[%s715_s1 + $0x87] ss:$8 sm:$0xf] %vm3_vm0, %v271_v24  }
  0xa2   :  { %374 = vst.msk [vmem:[%s715_s1 + $0x87] ss:$8 sm:$0xf0] %vm3_vm0, %v271_v24  }
  0xa4   :  { %v201_v26 = vpop.permute.xlu0 %200   ;;  %v210_v27 = vpop.permute.xlu1 %209  }
  0xa5   :  { %351 = vst.msk [vmem:[%s715_s1 + $0x85] ss:$8 sm:$0xf] %vm3_vm0, %v201_v26  }
  0xa6   :  { %352 = vst.msk [vmem:[%s715_s1 + $0x85] ss:$8 sm:$0xf0] %vm3_vm0, %v201_v26  }
  0xa7   :  { %354 = vst.msk [vmem:[%s715_s1 + $0xc5] ss:$8 sm:$0xf] %vm3_vm0, %v210_v27  }
  0xa8   :  { %355 = vst.msk [vmem:[%s715_s1 + $0xc5] ss:$8 sm:$0xf0] %vm3_vm0, %v210_v27  }
  0xac   :  { %v227_v29 = vpop.permute.xlu0 %226   ;;  %v236_v30 = vpop.permute.xlu1 %235  }
  0xad   :  { %359 = vst.msk [vmem:[%s715_s1 + $0x46] ss:$8 sm:$0xf] %vm3_vm0, %v227_v29  }
  0xae   :  { %360 = vst.msk [vmem:[%s715_s1 + $0x46] ss:$8 sm:$0xf0] %vm3_vm0, %v227_v29  }
  0xaf   :  { %362 = vst.msk [vmem:[%s715_s1 + $0x86] ss:$8 sm:$0xf] %vm3_vm0, %v236_v30  }
  0xb0   :  { %363 = vst.msk [vmem:[%s715_s1 + $0x86] ss:$8 sm:$0xf0] %vm3_vm0, %v236_v30  }
  0xb4   :  { %v253_v32 = vpop.permute.xlu0 %252   ;;  %v262_v33 = vpop.permute.xlu1 %261  }
  0xb5   :  { %367 = vst.msk [vmem:[%s715_s1 + $0x7] ss:$8 sm:$0xf] %vm3_vm0, %v253_v32  }
  0xb6   :  { %368 = vst.msk [vmem:[%s715_s1 + $0x7] ss:$8 sm:$0xf0] %vm3_vm0, %v253_v32  }
  0xb7   :  { %370 = vst.msk [vmem:[%s715_s1 + $0x47] ss:$8 sm:$0xf] %vm3_vm0, %v262_v33  }
  0xb8   :  { %371 = vst.msk [vmem:[%s715_s1 + $0x47] ss:$8 sm:$0xf0] %vm3_vm0, %v262_v33  }
  0xbc   :  { %v280_v35 = vpop.permute.xlu0 %279  }
  0xbd   :  { %376 = vst.msk [vmem:[%s715_s1 + $0xc7] ss:$8 sm:$0xf] %vm3_vm0, %v280_v35  }
  0xbe   :  { %377 = vst.msk [vmem:[%s715_s1 + $0xc7] ss:$8 sm:$0xf0] %vm3_vm0, %v280_v35  }

</bundles_post_ra>
